<compile_context>
chip_gen: v7x
topology: tpu7x:2x2x1
jax: 0.10.0
libtpu: 0.0.40
codegen_flags: <defaults>
</compile_context>

<pallas_src>
import functools

import numpy as np
import jax
import jax.numpy as jnp
from jax import lax
from jax.experimental import pallas as pl
from jax.experimental.pallas import tpu as pltpu

SMALL_NUM = float(np.log(1e-45))   # ~ -103.28, same constant as the PyTorch module
TEMPERATURE = 0.1
NEG_BIG = -1e30                    # finite "-inf" for padded columns


def _dcl_kernel(z1r_ref, z1c_ref, z2c_ref, out_ref,
                m_sc, l_sc, pos_sc, z1s_sc, *, b_actual, padded_cols):
    i = pl.program_id(0)          # row tile of z1
    j = pl.program_id(1)          # column tile of the negatives (rows of z1/z2)
    tm = z1r_ref.shape[0]
    tn = z1c_ref.shape[0]
    last_j = pl.num_programs(1) - 1

    # ---- per-row-tile init + hoisted 1/T scaling of the row operand (once per i) ----
    @pl.when(j == 0)
    def _():
        m_sc[...] = jnp.full_like(m_sc, -jnp.inf)
        l_sc[...] = jnp.zeros_like(l_sc)
        pos_sc[...] = jnp.zeros_like(pos_sc)
        inv_t = jnp.float32(1.0 / TEMPERATURE)
        z1s_sc[...] = (z1r_ref[...].astype(jnp.float32) * inv_t).astype(z1s_sc.dtype)

    z1s = z1s_sc[...]             # (tm, D), already carries the 1/T scale

    # Contract the shared last dim of both operands (A @ B^T) -> no transpose of
    # the (tile, D) VMEM blocks before the MXU; accumulate in f32.
    dn = (((1,), (1,)), ((), ()))
    s_self = lax.dot_general(z1s, z1c_ref[...], dn,
                             preferred_element_type=jnp.float32)    # (tm, tn) = z1 z1^T / T
    s_cross = lax.dot_general(z1s, z2c_ref[...], dn,
                              preferred_element_type=jnp.float32)   # (tm, tn) = z1 z2^T / T

    def online_update(a, b):
        # Online logsumexp over the concatenated [self, cross] negatives.
        # Only 2 cross-lane reductions per step (max & sum of elementwise-combined tiles).
        m_prev = m_sc[...]
        tile_max = jnp.max(jnp.maximum(a, b), axis=1, keepdims=True)
        m_new = jnp.maximum(m_prev, tile_max)
        alpha = jnp.exp(m_prev - m_new)
        p = jnp.sum(jnp.exp(a - m_new) + jnp.exp(b - m_new), axis=1, keepdims=True)
        l_sc[...] = alpha * l_sc[...] + p
        m_sc[...] = m_new

    padded = b_actual < padded_cols   # static Python bool
    if padded:
        needs_mask = jnp.logical_or(i == j, j == last_j)
    else:
        needs_mask = (i == j)

    @pl.when(needs_mask)
    def _():
        # Additive diagonal mask (matches neg_mask * SMALL_NUM in the reference) and,
        # if padded, exclusion of the padded columns. rows == cols is only possible
        # when i == j (tm == tn), so the where is self-guarding inside this branch.
        rows = i * tm + lax.broadcasted_iota(jnp.int32, (tm, tn), 0)
        cols = j * tn + lax.broadcasted_iota(jnp.int32, (tm, tn), 1)
        add = jnp.where(rows == cols, jnp.float32(SMALL_NUM), jnp.float32(0.0))
        if padded:
            add = add + jnp.where(cols < b_actual,
                                  jnp.float32(0.0), jnp.float32(NEG_BIG))
        online_update(s_self + add, s_cross + add)

    @pl.when(jnp.logical_not(needs_mask))
    def _():
        online_update(s_self, s_cross)

    # Positive term: -diag(z1 z2^T)/T computed directly from the (tile, D) operands
    # (z1s already carries the 1/T scale); the matching z2 rows are the j == i tile.
    @pl.when(i == j)
    def _():
        pos_sc[...] = -jnp.sum(z1s.astype(jnp.float32)
                               * z2c_ref[...].astype(jnp.float32),
                               axis=1, keepdims=True)

    @pl.when(j == last_j)
    def _():
        out_ref[...] = pos_sc[...] + jnp.log(l_sc[...]) + m_sc[...]


def _round_up(x, m):
    return -(-x // m) * m


def _pick_tile(B, D, itemsize):
    """Choose the (square) tile and a VMEM limit, chip/VMEM-budget aware."""
    if B <= 128:
        tile = max(8, _round_up(B, 8))                 # single tile
    else:
        # >= 2 row tiles so the "parallel" row axis spans both v7x TensorCores.
        tile = min(512, _round_up(-(-B // 2), 128))

    def vmem_need(t):
        inputs = 3 * 2 * t * D * itemsize              # 3 (tile, D) inputs, double-buffered
        scratch = t * D * itemsize + 4 * t * 128 * 4   # z1s scratch + (m, l, pos) + out block
        interm = 4 * t * t * 4                         # score/exp staging headroom (f32)
        return inputs + scratch + interm

    try:
        phys = int(getattr(pltpu.get_tpu_info(), "vmem_capacity_bytes",
                           64 * 1024 * 1024))
    except Exception:  # pragma: no cover - conservative fallback (v7x size)
        phys = 64 * 1024 * 1024

    budget = max(24 * 1024 * 1024, (phys * 3) // 4)    # 48 MiB on v7x, 96 MiB on v5e/v6e
    while tile > 128 and vmem_need(tile) > budget:
        tile = max(128, _round_up(tile // 2, 128))

    limit = int(min(phys - 8 * 1024 * 1024,
                    max(32 * 1024 * 1024, 2 * vmem_need(tile))))
    return tile, limit


@jax.jit
def dcl_loss(z1, z2):
    """One-way Decoupled Contrastive Loss (weight_fn=None), matching DCLLoss.forward."""
    assert z1.shape == z2.shape and z1.ndim == 2
    B, D = z1.shape
    itemsize = jnp.dtype(z1.dtype).itemsize

    tile, vmem_limit = _pick_tile(B, D, itemsize)
    b_pad = _round_up(B, tile)
    # Invariant required by the NEG_BIG pad mask: every column tile has >= 1 real column.
    assert b_pad - B < tile

    if b_pad != B:
        z1p = jnp.pad(z1, ((0, b_pad - B), (0, 0)))
        z2p = jnp.pad(z2, ((0, b_pad - B), (0, 0)))
    else:
        z1p, z2p = z1, z2
    g = b_pad // tile

    cost = pl.CostEstimate(
        flops=4 * b_pad * b_pad * D,                            # two (b_pad,D)x(D,b_pad) matmuls
        transcendentals=2 * b_pad * b_pad + g * b_pad + b_pad,  # exps + alpha exps + final log
        bytes_accessed=(1 + 2 * g) * b_pad * D * itemsize + b_pad * 4,
    )

    kernel = functools.partial(_dcl_kernel, b_actual=B, padded_cols=b_pad)
    per_row = pl.pallas_call(
        kernel,
        out_shape=jax.ShapeDtypeStruct((b_pad, 1), jnp.float32),
        grid_spec=pltpu.PrefetchScalarGridSpec(
            num_scalar_prefetch=0,
            grid=(g, g),
            in_specs=[
                pl.BlockSpec((tile, D), lambda i, j: (i, 0)),   # z1 row tile
                pl.BlockSpec((tile, D), lambda i, j: (j, 0)),   # z1 column tile
                pl.BlockSpec((tile, D), lambda i, j: (j, 0)),   # z2 column tile
            ],
            out_specs=pl.BlockSpec((tile, 1), lambda i, j: (i, 0)),
            scratch_shapes=[pltpu.VMEM((tile, 1), jnp.float32)] * 3   # m, l, pos
                         + [pltpu.VMEM((tile, D), z1.dtype)],         # scaled z1 row tile
        ),
        compiler_params=pltpu.CompilerParams(
            dimension_semantics=("parallel", "arbitrary"),
            vmem_limit_bytes=vmem_limit,
        ),
        cost_estimate=cost,
    )(z1p, z1p, z2p)

    return jnp.mean(per_row[:B, 0])


def dcl_loss_ref(z1, z2):
    """Pure-JAX reference, literal transcription of the PyTorch module."""
    z1 = z1.astype(jnp.float32)
    z2 = z2.astype(jnp.float32)
    cross = z1 @ z2.T
    positive_loss = -jnp.diag(cross) / TEMPERATURE
    neg_similarity = jnp.concatenate([z1 @ z1.T, cross], axis=1) / TEMPERATURE
    neg_mask = jnp.tile(jnp.eye(z1.shape[0], dtype=jnp.float32), (1, 2))
    negative_loss = jax.scipy.special.logsumexp(
        neg_similarity + neg_mask * SMALL_NUM, axis=1)
    return jnp.mean(positive_loss + negative_loss)


if __name__ == "__main__":
    # TODO(synk): weight_fn is None in this synthetic setup; a custom weight_fn
    # would be an arbitrary user callable and is not translated.
    B, D = 8, 32  # small embedding batch / hidden size
    key = jax.random.PRNGKey(0)
    k1, k2 = jax.random.split(key)
    z1 = jax.random.normal(k1, (B, D), dtype=jnp.float32)
    z2 = jax.random.normal(k2, (B, D), dtype=jnp.float32)
    # L2-normalize like typical contrastive embeddings (deterministic glue).
    z1 = z1 / jnp.linalg.norm(z1, axis=1, keepdims=True)
    z2 = z2 / jnp.linalg.norm(z2, axis=1, keepdims=True)

    loss = jax.block_until_ready(dcl_loss(z1, z2))
    ref = jax.block_until_ready(dcl_loss_ref(z1, z2))
    np.testing.assert_allclose(np.asarray(loss), np.asarray(ref),
                               rtol=1e-5, atol=1e-4)

    # Multi-tile + padded + 2-row-tile (megacore) path: grid (2, 2).
    B2, D2 = 300, 64
    k3, k4 = jax.random.split(k2)
    a = jax.random.normal(k3, (B2, D2), dtype=jnp.float32)
    b = jax.random.normal(k4, (B2, D2), dtype=jnp.float32)
    a = a / jnp.linalg.norm(a, axis=1, keepdims=True)
    b = b / jnp.linalg.norm(b, axis=1, keepdims=True)
    loss2 = jax.block_until_ready(dcl_loss(a, b))
    ref2 = jax.block_until_ready(dcl_loss_ref(a, b))
    np.testing.assert_allclose(np.asarray(loss2), np.asarray(ref2),
                               rtol=1e-5, atol=1e-4)

    # bf16 path (bf16 MXU with f32 accumulation); looser tolerance for bf16 rounding.
    a16 = a.astype(jnp.bfloat16)
    b16 = b.astype(jnp.bfloat16)
    loss3 = jax.block_until_ready(dcl_loss(a16, b16))
    ref3 = jax.block_until_ready(dcl_loss_ref(a16, b16))
    np.testing.assert_allclose(np.asarray(loss3), np.asarray(ref3),
                               rtol=5e-2, atol=1e-1)

    print("KERNEL_OK")
</pallas_src>

<mosaic_0001>
module attributes {stable_mosaic.version = 11 : i64} {
  func.func @_dcl_kernel(%arg0: i32, %arg1: i32, %arg2: memref<8x32xf32, #tpu.memory_space<vmem>>, %arg3: memref<8x32xf32, #tpu.memory_space<vmem>>, %arg4: memref<8x32xf32, #tpu.memory_space<vmem>>, %arg5: memref<8x1xf32, #tpu.memory_space<vmem>>, %arg6: memref<8x1xf32, #tpu.memory_space<vmem>>, %arg7: memref<8x1xf32, #tpu.memory_space<vmem>>, %arg8: memref<8x1xf32, #tpu.memory_space<vmem>>, %arg9: memref<8x32xf32, #tpu.memory_space<vmem>>) attributes {dimension_semantics = [#tpu.dimension_semantics<parallel>, #tpu.dimension_semantics<arbitrary>], iteration_bounds = array<i64: 1, 1>, scalar_prefetch = 0 : i64, scratch_operands = 4 : i64, tpu.core_type = #tpu.core_type<tc>, window_params = [{transform_indices = @transform_0, window_bounds = array<i64: 8, 32>}, {transform_indices = @transform_1, window_bounds = array<i64: 8, 32>}, {transform_indices = @transform_2, window_bounds = array<i64: 8, 32>}, {transform_indices = @transform_3, window_bounds = array<i64: 8, 1>}]} {
    %c0_i32 = arith.constant 0 : i32
    %0 = arith.cmpi eq, %arg1, %c0_i32 : i32
    %1 = arith.extui %0 : i1 to i32
    %c0_i32_0 = arith.constant 0 : i32
    %2 = arith.cmpi ne, %1, %c0_i32_0 : i32
    scf.if %2 {
      %cst_12 = arith.constant 0xFF800000 : f32
      %20 = vector.broadcast %cst_12 : f32 to vector<8x1xf32>
      %c0_13 = arith.constant 0 : index
      %c0_14 = arith.constant 0 : index
      %21 = vector.load %arg6[%c0_13, %c0_14] : memref<8x1xf32, #tpu.memory_space<vmem>>, vector<8x1xf32>
      tpu.vector_store %arg6[%c0_13, %c0_14], %20 {strides = array<i32>} : memref<8x1xf32, #tpu.memory_space<vmem>>, vector<8x1xf32>,
      %cst_15 = arith.constant 0.000000e+00 : f32
      %22 = vector.broadcast %cst_15 : f32 to vector<8x1xf32>
      %c0_16 = arith.constant 0 : index
      %c0_17 = arith.constant 0 : index
      %23 = vector.load %arg7[%c0_16, %c0_17] : memref<8x1xf32, #tpu.memory_space<vmem>>, vector<8x1xf32>
      tpu.vector_store %arg7[%c0_16, %c0_17], %22 {strides = array<i32>} : memref<8x1xf32, #tpu.memory_space<vmem>>, vector<8x1xf32>,
      %cst_18 = arith.constant 0.000000e+00 : f32
      %24 = vector.broadcast %cst_18 : f32 to vector<8x1xf32>
      %c0_19 = arith.constant 0 : index
      %c0_20 = arith.constant 0 : index
      %25 = vector.load %arg8[%c0_19, %c0_20] : memref<8x1xf32, #tpu.memory_space<vmem>>, vector<8x1xf32>
      tpu.vector_store %arg8[%c0_19, %c0_20], %24 {strides = array<i32>} : memref<8x1xf32, #tpu.memory_space<vmem>>, vector<8x1xf32>,
      %c0_21 = arith.constant 0 : index
      %c0_22 = arith.constant 0 : index
      %26 = vector.load %arg2[%c0_21, %c0_22] : memref<8x32xf32, #tpu.memory_space<vmem>>, vector<8x32xf32>
      %cst_23 = arith.constant 1.000000e+01 : f32
      %27 = vector.broadcast %cst_23 : f32 to vector<8x32xf32>
      %28 = arith.mulf %26, %27 : vector<8x32xf32>
      %c0_24 = arith.constant 0 : index
      %c0_25 = arith.constant 0 : index
      %29 = vector.load %arg9[%c0_24, %c0_25] : memref<8x32xf32, #tpu.memory_space<vmem>>, vector<8x32xf32>
      tpu.vector_store %arg9[%c0_24, %c0_25], %28 {strides = array<i32>} : memref<8x32xf32, #tpu.memory_space<vmem>>, vector<8x32xf32>,
    } else {
    }
    %c0 = arith.constant 0 : index
    %c0_1 = arith.constant 0 : index
    %3 = vector.load %arg9[%c0, %c0_1] : memref<8x32xf32, #tpu.memory_space<vmem>>, vector<8x32xf32>
    %c0_2 = arith.constant 0 : index
    %c0_3 = arith.constant 0 : index
    %4 = vector.load %arg3[%c0_2, %c0_3] : memref<8x32xf32, #tpu.memory_space<vmem>>, vector<8x32xf32>
    %cst = arith.constant dense<0.000000e+00> : vector<8x8xf32>
    %5 = tpu.matmul %3, %4, %cst {dimension_numbers = #tpu.dot_dimension_numbers<[1], [1], [0], [0], [0, 0, 1, 0], [], []>} : vector<8x32xf32>, vector<8x32xf32>, vector<8x8xf32> -> vector<8x8xf32>
    %c0_4 = arith.constant 0 : index
    %c0_5 = arith.constant 0 : index
    %6 = vector.load %arg4[%c0_4, %c0_5] : memref<8x32xf32, #tpu.memory_space<vmem>>, vector<8x32xf32>
    %cst_6 = arith.constant dense<0.000000e+00> : vector<8x8xf32>
    %7 = tpu.matmul %3, %6, %cst_6 {dimension_numbers = #tpu.dot_dimension_numbers<[1], [1], [0], [0], [0, 0, 1, 0], [], []>} : vector<8x32xf32>, vector<8x32xf32>, vector<8x8xf32> -> vector<8x8xf32>
    %8 = arith.cmpi eq, %arg0, %arg1 : i32
    %9 = arith.extui %8 : i1 to i32
    %c0_i32_7 = arith.constant 0 : i32
    %10 = arith.cmpi ne, %9, %c0_i32_7 : i32
    scf.if %10 {
      %c8_i32 = arith.constant 8 : i32
      %20 = arith.muli %arg0, %c8_i32 : i32
      %21 = tpu.iota {dimensions = array<i32: 0>} : vector<8x8xi32>
      %22 = vector.broadcast %20 : i32 to vector<8x8xi32>
      %23 = arith.addi %22, %21 : vector<8x8xi32>
      %c8_i32_12 = arith.constant 8 : i32
      %24 = arith.muli %arg1, %c8_i32_12 : i32
      %25 = tpu.iota {dimensions = array<i32: 1>} : vector<8x8xi32>
      %26 = vector.broadcast %24 : i32 to vector<8x8xi32>
      %27 = arith.addi %26, %25 : vector<8x8xi32>
      %28 = arith.cmpi eq, %23, %27 : vector<8x8xi32>
      %cst_13 = arith.constant -103.616325 : f32
      %cst_14 = arith.constant 0.000000e+00 : f32
      %29 = vector.broadcast %cst_13 : f32 to vector<8x8xf32>
      %30 = vector.broadcast %cst_14 : f32 to vector<8x8xf32>
      %31 = arith.select %28, %29, %30 : vector<8x8xi1>, vector<8x8xf32>
      %32 = arith.addf %5, %31 : vector<8x8xf32>
      %33 = arith.addf %7, %31 : vector<8x8xf32>
      %c0_15 = arith.constant 0 : index
      %c0_16 = arith.constant 0 : index
      %34 = vector.load %arg6[%c0_15, %c0_16] : memref<8x1xf32, #tpu.memory_space<vmem>>, vector<8x1xf32>
      %35 = arith.maximumf %32, %33 : vector<8x8xf32>
      %cst_17 = arith.constant dense<0xFF800000> : vector<8xf32>
      %36 = vector.multi_reduction <maximumf>, %35, %cst_17 [1] : vector<8x8xf32> to vector<8xf32>
      %37 = vector.shape_cast %36 : vector<8xf32> to vector<8x1xf32>
      %38 = arith.maximumf %34, %37 : vector<8x1xf32>
      %39 = arith.subf %34, %38 : vector<8x1xf32>
      %40 = math.exp %39 : vector<8x1xf32>
      %41 = vector.broadcast %38 : vector<8x1xf32> to vector<8x8xf32>
      %42 = arith.subf %32, %41 : vector<8x8xf32>
      %43 = math.exp %42 : vector<8x8xf32>
      %44 = vector.broadcast %38 : vector<8x1xf32> to vector<8x8xf32>
      %45 = arith.subf %33, %44 : vector<8x8xf32>
      %46 = math.exp %45 : vector<8x8xf32>
      %47 = arith.addf %43, %46 : vector<8x8xf32>
      %cst_18 = arith.constant dense<0.000000e+00> : vector<8xf32>
      %48 = vector.multi_reduction <add>, %47, %cst_18 [1] : vector<8x8xf32> to vector<8xf32>
      %49 = vector.shape_cast %48 : vector<8xf32> to vector<8x1xf32>
      %c0_19 = arith.constant 0 : index
      %c0_20 = arith.constant 0 : index
      %50 = vector.load %arg7[%c0_19, %c0_20] : memref<8x1xf32, #tpu.memory_space<vmem>>, vector<8x1xf32>
      %51 = arith.mulf %40, %50 : vector<8x1xf32>
      %52 = arith.addf %51, %49 : vector<8x1xf32>
      %c0_21 = arith.constant 0 : index
      %c0_22 = arith.constant 0 : index
      %53 = vector.load %arg7[%c0_21, %c0_22] : memref<8x1xf32, #tpu.memory_space<vmem>>, vector<8x1xf32>
      tpu.vector_store %arg7[%c0_21, %c0_22], %52 {strides = array<i32>} : memref<8x1xf32, #tpu.memory_space<vmem>>, vector<8x1xf32>,
      %c0_23 = arith.constant 0 : index
      %c0_24 = arith.constant 0 : index
      %54 = vector.load %arg6[%c0_23, %c0_24] : memref<8x1xf32, #tpu.memory_space<vmem>>, vector<8x1xf32>
      tpu.vector_store %arg6[%c0_23, %c0_24], %38 {strides = array<i32>} : memref<8x1xf32, #tpu.memory_space<vmem>>, vector<8x1xf32>,
    } else {
    }
    %true = arith.constant true
    %11 = arith.xori %8, %true : i1
    %12 = arith.extui %11 : i1 to i32
    %c0_i32_8 = arith.constant 0 : i32
    %13 = arith.cmpi ne, %12, %c0_i32_8 : i32
    scf.if %13 {
      %c0_12 = arith.constant 0 : index
      %c0_13 = arith.constant 0 : index
      %20 = vector.load %arg6[%c0_12, %c0_13] : memref<8x1xf32, #tpu.memory_space<vmem>>, vector<8x1xf32>
      %21 = arith.maximumf %5, %7 : vector<8x8xf32>
      %cst_14 = arith.constant dense<0xFF800000> : vector<8xf32>
      %22 = vector.multi_reduction <maximumf>, %21, %cst_14 [1] : vector<8x8xf32> to vector<8xf32>
      %23 = vector.shape_cast %22 : vector<8xf32> to vector<8x1xf32>
      %24 = arith.maximumf %20, %23 : vector<8x1xf32>
      %25 = arith.subf %20, %24 : vector<8x1xf32>
      %26 = math.exp %25 : vector<8x1xf32>
      %27 = vector.broadcast %24 : vector<8x1xf32> to vector<8x8xf32>
      %28 = arith.subf %5, %27 : vector<8x8xf32>
      %29 = math.exp %28 : vector<8x8xf32>
      %30 = vector.broadcast %24 : vector<8x1xf32> to vector<8x8xf32>
      %31 = arith.subf %7, %30 : vector<8x8xf32>
      %32 = math.exp %31 : vector<8x8xf32>
      %33 = arith.addf %29, %32 : vector<8x8xf32>
      %cst_15 = arith.constant dense<0.000000e+00> : vector<8xf32>
      %34 = vector.multi_reduction <add>, %33, %cst_15 [1] : vector<8x8xf32> to vector<8xf32>
      %35 = vector.shape_cast %34 : vector<8xf32> to vector<8x1xf32>
      %c0_16 = arith.constant 0 : index
      %c0_17 = arith.constant 0 : index
      %36 = vector.load %arg7[%c0_16, %c0_17] : memref<8x1xf32, #tpu.memory_space<vmem>>, vector<8x1xf32>
      %37 = arith.mulf %26, %36 : vector<8x1xf32>
      %38 = arith.addf %37, %35 : vector<8x1xf32>
      %c0_18 = arith.constant 0 : index
      %c0_19 = arith.constant 0 : index
      %39 = vector.load %arg7[%c0_18, %c0_19] : memref<8x1xf32, #tpu.memory_space<vmem>>, vector<8x1xf32>
      tpu.vector_store %arg7[%c0_18, %c0_19], %38 {strides = array<i32>} : memref<8x1xf32, #tpu.memory_space<vmem>>, vector<8x1xf32>,
      %c0_20 = arith.constant 0 : index
      %c0_21 = arith.constant 0 : index
      %40 = vector.load %arg6[%c0_20, %c0_21] : memref<8x1xf32, #tpu.memory_space<vmem>>, vector<8x1xf32>
      tpu.vector_store %arg6[%c0_20, %c0_21], %24 {strides = array<i32>} : memref<8x1xf32, #tpu.memory_space<vmem>>, vector<8x1xf32>,
    } else {
    }
    %14 = arith.cmpi eq, %arg0, %arg1 : i32
    %15 = arith.extui %14 : i1 to i32
    %c0_i32_9 = arith.constant 0 : i32
    %16 = arith.cmpi ne, %15, %c0_i32_9 : i32
    scf.if %16 {
      %c0_12 = arith.constant 0 : index
      %c0_13 = arith.constant 0 : index
      %20 = vector.load %arg4[%c0_12, %c0_13] : memref<8x32xf32, #tpu.memory_space<vmem>>, vector<8x32xf32>
      %21 = arith.mulf %3, %20 : vector<8x32xf32>
      %cst_14 = arith.constant dense<0.000000e+00> : vector<8xf32>
      %22 = vector.multi_reduction <add>, %21, %cst_14 [1] : vector<8x32xf32> to vector<8xf32>
      %23 = vector.shape_cast %22 : vector<8xf32> to vector<8x1xf32>
      %cst_15 = arith.constant 0.000000e+00 : f32
      %24 = vector.broadcast %cst_15 : f32 to vector<8x1xf32>
      %25 = arith.subf %24, %23 : vector<8x1xf32>
      %c0_16 = arith.constant 0 : index
      %c0_17 = arith.constant 0 : index
      %26 = vector.load %arg8[%c0_16, %c0_17] : memref<8x1xf32, #tpu.memory_space<vmem>>, vector<8x1xf32>
      tpu.vector_store %arg8[%c0_16, %c0_17], %25 {strides = array<i32>} : memref<8x1xf32, #tpu.memory_space<vmem>>, vector<8x1xf32>,
    } else {
    }
    %c0_i32_10 = arith.constant 0 : i32
    %17 = arith.cmpi eq, %arg1, %c0_i32_10 : i32
    %18 = arith.extui %17 : i1 to i32
    %c0_i32_11 = arith.constant 0 : i32
    %19 = arith.cmpi ne, %18, %c0_i32_11 : i32
    scf.if %19 {
      %c0_12 = arith.constant 0 : index
      %c0_13 = arith.constant 0 : index
      %20 = vector.load %arg8[%c0_12, %c0_13] : memref<8x1xf32, #tpu.memory_space<vmem>>, vector<8x1xf32>
      %c0_14 = arith.constant 0 : index
      %c0_15 = arith.constant 0 : index
      %21 = vector.load %arg7[%c0_14, %c0_15] : memref<8x1xf32, #tpu.memory_space<vmem>>, vector<8x1xf32>
      %22 = math.log %21 : vector<8x1xf32>
      %23 = arith.addf %20, %22 : vector<8x1xf32>
      %c0_16 = arith.constant 0 : index
      %c0_17 = arith.constant 0 : index
      %24 = vector.load %arg6[%c0_16, %c0_17] : memref<8x1xf32, #tpu.memory_space<vmem>>, vector<8x1xf32>
      %25 = arith.addf %23, %24 : vector<8x1xf32>
      %c0_18 = arith.constant 0 : index
      %c0_19 = arith.constant 0 : index
      %26 = vector.load %arg5[%c0_18, %c0_19] : memref<8x1xf32, #tpu.memory_space<vmem>>, vector<8x1xf32>
      tpu.vector_store %arg5[%c0_18, %c0_19], %25 {strides = array<i32>} : memref<8x1xf32, #tpu.memory_space<vmem>>, vector<8x1xf32>,
    } else {
    }
    return
  }
  func.func @transform_0(%arg0: i32, %arg1: i32) -> (i32, i32) {
    %c0_i32 = arith.constant 0 : i32
    %c0_i32_0 = arith.constant 0 : i32
    return %arg0, %c0_i32 : i32, i32
  }
  func.func @transform_1(%arg0: i32, %arg1: i32) -> (i32, i32) {
    %c0_i32 = arith.constant 0 : i32
    %c0_i32_0 = arith.constant 0 : i32
    return %arg1, %c0_i32 : i32, i32
  }
  func.func @transform_2(%arg0: i32, %arg1: i32) -> (i32, i32) {
    %c0_i32 = arith.constant 0 : i32
    %c0_i32_0 = arith.constant 0 : i32
    return %arg1, %c0_i32 : i32, i32
  }
  func.func @transform_3(%arg0: i32, %arg1: i32) -> (i32, i32) {
    %c0_i32 = arith.constant 0 : i32
    %c0_i32_0 = arith.constant 0 : i32
    return %arg0, %c0_i32 : i32, i32
  }
}

</mosaic_0001>

<bundles_post_ra>
// kernel: dcl_loss.1
= control target key start
LH: loop header
LB: loop body
LE: loop exit
PB: predicated region body
PF: predicated region fallthrough
CT: control target
= control target key end

     0   :  { %8 = vsyncpa [#allocation7], 0  ;;  %s512_s0 = inlined_call_operand.hbm [shape: f32[8,32], index: 0, kind: input, shape index: {}, may-alias: {0,1}]   ;;  %s513_s1 = inlined_call_operand.hbm [shape: f32[8,32], index: 1, kind: input, shape index: {}, may-alias: {0,1}]   ;;  %s514_s2 = inlined_call_operand.hbm [shape: f32[8,32], index: 2, kind: input, shape index: {}]   ;;  %s515_s3 = inlined_call_operand.vmem [shape: f32[8,1], index: 3, kind: output, shape index: {}]  }
   0x1   :  { %9 = vsyncpa [#allocation9], 0  ;;  %s431_s12 = smov [#allocation8]   ;;  %s432_s14 = smov [#allocation6]  }
   0x2   :  { %s26_s13 = sshll.u32 %s431_s12, 4  ;;  %s16_s15 = sshll.u32 %s432_s14, 4  ;;  %s27_s13 = int_to_ptr.vmem [resolvable:$true] %s26_s13  ;;  %s17_s15 = int_to_ptr.vmem [resolvable:$true] %s16_s15 }
   0x3   :  { %s361_s18 = scalar_lea.hbm %s513_s1, 128 }
   0x4   :  { %p362_p0 = scmp.ne.s32.totalorder %s513_s1, %s361_s18  ;;  %p365_p1 = scmp.lt.u32.totalorder %s361_s18, %s513_s1 }
   0x6   :  { %p367_p2 = pnand %p365_p1, %p362_p0 }
   0x8   :  { %370 = shalt.err (!%p367_p2)
}
   0x9   :  { %s371_s23 = scalar_lea.vmem %s27_s13, 128  ;;  %p376_p4 = scmp.lt.s32.totalorder %s27_s13, %s27_s13 }
   0xa   :  { %p372_p3 = scmp.ne.s32.totalorder %s27_s13, %s371_s23  ;;  %p377_p5 = scmp.lt.s32.totalorder %s371_s23, %s371_s23 }
   0xc   :  { %p378_p6 = por %p377_p5, %p376_p4 }
   0xe   :  { %p379_p7 = pnand %p378_p6, %p372_p3 }
  0x10   :  { %382 = shalt.err (!%p379_p7)
}
  0x11   :  { %29 = dma.hbm_to_vmem [thread:$0]  %s513_s1, 128, %s27_s13, [#allocation9]  }
  0x12   :  { %s383_s28 = scalar_lea.hbm %s512_s0, 128 }
  0x13   :  { %p384_p8 = scmp.ne.s32.totalorder %s512_s0, %s383_s28  ;;  %p387_p9 = scmp.lt.u32.totalorder %s383_s28, %s512_s0 }
  0x15   :  { %p389_p10 = pnand %p387_p9, %p384_p8 }
  0x17   :  { %392 = shalt.err (!%p389_p10)
}
  0x18   :  { %s393_s6 = scalar_lea.vmem %s17_s15, 128  ;;  %p398_p12 = scmp.lt.s32.totalorder %s17_s15, %s17_s15 }
  0x19   :  { %p394_p11 = scmp.ne.s32.totalorder %s17_s15, %s393_s6  ;;  %p399_p13 = scmp.lt.s32.totalorder %s393_s6, %s393_s6 }
  0x1b   :  { %p400_p0 = por %p399_p13, %p398_p12 }
  0x1d   :  { %p401_p1 = pnand %p400_p0, %p394_p11 }
  0x1f   :  { %404 = shalt.err (!%p401_p1)
}
  0x20   :  { %19 = dma.hbm_to_vmem [thread:$0]  %s512_s0, 128, %s17_s15, [#allocation7]  }
  0x21   :  { %s433_s8 = smov [#allocation10]   ;;  %s405_s12 = scalar_lea.hbm %s514_s2, 128 }
  0x22   :  { %s36_s9 = sshll.u32 %s433_s8, 4  ;;  %p406_p2 = scmp.ne.s32.totalorder %s514_s2, %s405_s12  ;;  %s37_s9 = int_to_ptr.vmem [resolvable:$true] %s36_s9 }
  0x23   :  { %p409_p3 = scmp.lt.u32.totalorder %s405_s12, %s514_s2 }
  0x25   :  { %p411_p4 = pnand %p409_p3, %p406_p2 }
  0x27   :  { %414 = shalt.err (!%p411_p4)
}
  0x28   :  { %s415_s18 = scalar_lea.vmem %s37_s9, 128  ;;  %p420_p6 = scmp.lt.s32.totalorder %s37_s9, %s37_s9 }
  0x29   :  { %p416_p5 = scmp.ne.s32.totalorder %s37_s9, %s415_s18  ;;  %p421_p7 = scmp.lt.s32.totalorder %s415_s18, %s415_s18 }
  0x2b   :  { %p422_p8 = por %p421_p7, %p420_p6 }
  0x2d   :  { %p423_p9 = pnand %p422_p8, %p416_p5 }
  0x2f   :  { %426 = shalt.err (!%p423_p9)
}
  0x30   :  { %39 = dma.hbm_to_vmem [thread:$0]  %s514_s2, 128, %s37_s9, [#allocation9]  }
  0x31   :  { %427 = dma.done.wait [#allocation7], 128  }
  0x32   :  { %428 = vsyncadd [#allocation7], 4294967168 }
  0x33   :  { %429 = dma.done.wait [#allocation9], 256  }
  0x34   :  { %430 = vsyncadd [#allocation9], 4294967040  ;;  %v434_v0 = vmov 0.0   ;;  %vm435_vm0 = vmmov 0   ;;  %v57_v1 = vld [vmem:[#allocation6] sm:$0xff]  ;;  %vm59_vm1 = vcmask 261120   ;;  %v219_v7 = vlaneseq }
  0x35   :  { %335 = vmatprep.subr.mxu0 %v434_v0  ;;  %340 = vmatprep.subr.mxu1 %v434_v0  ;;  %v62_v2 = vld [vmem:[#allocation8] sm:$0xff]  ;;  %v140_v3 = vld [vmem:[#allocation10] sm:$0xff]  ;;  %v58_v4 = vmul.f32 10.0, %v57_v1  ;;  %vm53_vm2 = vcmask 7168   ;;  %v436_v6 = vmov -inf   ;;  %vm234_vm4 = vcmask 64512  }
  0x36   :  { %337 = vmatprep.mubr.msk.f32.mxu0 %vm435_vm0, %v434_v0  ;;  %342 = vmatprep.mubr.msk.f32.mxu1 %vm435_vm0, %v434_v0  ;;  %54 = vst.msk [vmem:[#allocation2] sm:$0xff] %vm53_vm2, %v436_v6  ;;  %55 = vst.msk [vmem:[#allocation3] sm:$0xff] %vm53_vm2, %v434_v0  ;;  %v220_v8 = vshrl.u32 %v219_v7, 7  ;;  %v225_v9 = vand.u32 127, %v219_v7  ;;  %v437_v19 = vmov 0  }
  0x37   :  { %336 = vmatpush3.xpose.msk.msra.mxu0 %vm59_vm1, %v62_v2  ;;  %341 = vmatpush3.xpose.msk.msra.mxu1 %vm59_vm1, %v140_v3  ;;  %60 = vst.msk [vmem:[#allocation5] sm:$0xff] %vm59_vm1, %v58_v4 }
  0x38   :  { %56 = vst.msk [vmem:[#allocation4] sm:$0xff] %vm53_vm2, %v434_v0  ;;  %vm228_vm3 = vcmp.eq.s32.totalorder %v220_v8, %v225_v9  ;;  %352 = vset.pattern.permute.xlu0 %v437_v19 }
  0x39   :  { %v229_v10 = vsel %vm228_vm3, -103.616325, %v434_v0 }
  0x3d   :  { %v232_v20 = vld [vmem:[#allocation2] sm:$0xff]  ;;  %v257_v37 = vld [vmem:[#allocation3] sm:$0xff] }
  0x3e   :  { %v61_v5 = vld [vmem:[#allocation5] sm:$0xff] }
  0x3f   :  { %338 = vmatmul.mubr.msk.f32.vlgmr.msra.gmra.mrb[0].mxu0 %vm59_vm1, %v61_v5  ;;  %343 = vmatmul.mubr.msk.f32.vlgmr.msra.gmra.mrb[0].mxu1 %vm59_vm1, %v61_v5  ;;  %v302_v32 = vmul.f32 %v140_v3, %v61_v5 }
  0x41   :  { %v303_v34 = vsel %vm59_vm1, %v302_v32, 0.0 }
 0x112   :  { %v136_v11 = vpop.f32.mrb[0].mxu0  ;;  %v210_v12 = vpop.f32.mrb[0].mxu1 }
 0x113   :  { %v230_v13 = vadd.f32 %v229_v10, %v136_v11  ;;  %v231_v14 = vadd.f32 %v229_v10, %v210_v12  ;;  %v339_v15 = vpop.f32.mrb[1].mxu0  ;;  %v344_v16 = vpop.f32.mrb[1].mxu1 }
 0x115   :  { %v233_v17 = vmax.f32 %v230_v13, %v231_v14 }
 0x117   :  { %v235_v18 = vsel %vm234_vm4, %v233_v17, -inf }
 0x118   :  { %236 = vmax.xlane.f32.xlu0 %v235_v18 }
 0x1a5   :  { %v237_v21 = vpop.xlane.xlu0 %236 }
 0x1a6   :  { %v238_v22 = vmax.f32 %v232_v20, %v237_v21 }
 0x1a8   :  { %v239_v23 = vsub.f32 %v232_v20, %v238_v22  ;;  %262 = vst.msk [vmem:[#allocation2] sm:$0xff] %vm53_vm2, %v238_v22  ;;  %244 = vperm.xlu0 %352, %v238_v22  }
 0x1aa   :  { %v240_v35 = vmul.f32 1.442695, %v239_v23 }
 0x1af   :  { %v317_v48 = vld [vmem:[#allocation2] sm:$0xff] }
 0x227   :  { %v245_v24 = vpop.permute.xlu0 %244 }
 0x228   :  { %v247_v25 = vsub.f32 %v230_v13, %v245_v24  ;;  %v250_v26 = vsub.f32 %v231_v14, %v245_v24 }
 0x22a   :  { %v248_v27 = vmul.f32 1.442695, %v247_v25  ;;  %v251_v28 = vmul.f32 1.442695, %v250_v26 }
 0x22c   :  { %353 = vpow2.f32 %v248_v27 }
 0x22d   :  { %355 = vpow2.f32 %v251_v28 }
 0x22e   :  { %357 = vpow2.f32 %v240_v35 }
 0x236   :  { %v354_v29 = vpop.eup %353 }
 0x237   :  { %v356_v30 = vpop.eup %355 }
 0x238   :  { %v253_v31 = vadd.f32 %v356_v30, %v354_v29  ;;  %v358_v36 = vpop.eup %357 }
 0x239   :  { %v258_v38 = vmul.f32 %v358_v36, %v257_v37 }
 0x23a   :  { %v254_v33 = vsel %vm234_vm4, %v253_v31, 0.0 }
 0x23b   :  { %255 = vadd.xlane.f32.xlu1 %v254_v33 }
 0x23f   :  { %304 = vadd.xlane.f32.xlu1 %v303_v34 }
 0x2c8   :  { %v256_v39 = vpop.xlane.xlu1 %255 }
 0x2c9   :  { %v259_v40 = vadd.f32 %v258_v38, %v256_v39 }
 0x2cb   :  { %261 = vst.msk [vmem:[#allocation3] sm:$0xff] %vm53_vm2, %v259_v40 }
 0x2cc   :  { %v305_v41 = vpop.xlane.xlu1 %304 }
 0x2cd   :  { %v306_v42 = vsub.f32 0.0, %v305_v41 }
 0x2cf   :  { %308 = vst.msk [vmem:[#allocation4] sm:$0xff] %vm53_vm2, %v306_v42 }
 0x2d2   :  { %v313_v43 = vld [vmem:[#allocation3] sm:$0xff] }
 0x2d3   :  { %359 = vlog2.f32 %v313_v43 }
 0x2d6   :  { %v312_v45 = vld [vmem:[#allocation4] sm:$0xff] }
 0x2dd   :  { %v360_v44 = vpop.eup %359 }
 0x2de   :  { %v315_v46 = vmul.f32 0.6931472, %v360_v44 }
 0x2e0   :  { %v316_v47 = vadd.f32 %v315_v46, %v312_v45 }
 0x2e2   :  { %v318_v49 = vadd.f32 %v317_v48, %v316_v47 }
 0x2e4   :  { %320 = vst.msk [vmem:[%s515_s3] sm:$0xff] %vm53_vm2, %v318_v49 }
 0x2e5   :  { %325 = vsyncpa [#allocation7], 1 }
 0x2e6   :  { %326 = vsyncpa [#allocation9], 1 }

</bundles_post_ra>
